<compile_context>
chip_gen: v7x
topology: tpu7x:2x2x1
jax: 0.10.0
libtpu: 0.0.40
codegen_flags: <defaults>
</compile_context>

<pallas_src>
import functools

import jax
import jax.numpy as jnp
from jax.experimental import pallas as pl
from jax.experimental.pallas import tpu as pltpu

IMG_DIM = 784
LABEL_DIM = 10
IN_DIM = IMG_DIM + LABEL_DIM   # 794
HID_DIM = 200
HID_PAD = 256                  # 2 x 128 lanes
OUT_DIM = 1
LN_EPS = 1e-5
LEAK = 0.02


def _discriminator_kernel(img_ref, lab_ref, w1i_ref, w1l_ref, pack_ref,
                          w2t_ref, b2_ref, o_ref):
    # ---- Linear(794 -> 200): the torch.cat is fused into two MXU dots.
    # img/label arrive bf16 (producer-side cast); f32 accumulation on the MXU.
    img = img_ref[...].astype(jnp.bfloat16)            # (tb, 784)
    lab = lab_ref[...].astype(jnp.bfloat16)            # (tb, 10)
    h = jnp.dot(img, w1i_ref[...], preferred_element_type=jnp.float32)
    h = h + jnp.dot(lab, w1l_ref[...], preferred_element_type=jnp.float32)
    h = h + pack_ref[0:1, :]                           # b1, (1, HID_PAD) broadcast

    # ---- LeakyReLU(0.02) (VPU, f32); padded lanes [200:256] stay exactly 0 ----
    h = jnp.where(h > 0, h, LEAK * h)

    # ---- LayerNorm(200). Padded lanes are exact zeros, so the 256-lane sum equals the
    # 200-feature sum; variance is two-pass with padded lanes masked out of the stats.
    inv_n = jnp.float32(1.0 / HID_DIM)
    lane = jax.lax.broadcasted_iota(jnp.int32, (1, HID_PAD), 1)
    live = lane < HID_DIM
    mean = jnp.sum(h, axis=-1, keepdims=True) * inv_n
    d = jnp.where(live, h - mean, 0.0)
    var = jnp.sum(d * d, axis=-1, keepdims=True) * inv_n
    hn = (h - mean) * jax.lax.rsqrt(var + LN_EPS)
    hn = hn * pack_ref[1:2, :] + pack_ref[2:3, :]      # gamma / beta (padded lanes -> 0)

    # ---- Linear(200 -> 1) produced lane-major: W2^T (8,256) @ hn^T (256,tb) -> (8,tb).
    # Rows 1..7 of W2^T are zero padding; row 0 is the live output. The f32 transpose
    # operand (tb, 256) is (8,128)-aligned (tb is a multiple of 8), XLU has slack.
    y = jnp.dot(w2t_ref[...], hn.T, preferred_element_type=jnp.float32)
    y = y[0:1, :] + b2_ref[0]                          # (1, tb)

    # ---- Sigmoid (exact; EUP exp/div have plenty of slack in this mem-bound kernel) ----
    o_ref[...] = 1.0 / (1.0 + jnp.exp(-y))


@functools.partial(jax.jit, static_argnames=("tile_b",))
def discriminator_forward(img, label, kparams, *, tile_b=512):
    """img: (B, 784), label: (B, 10) one-hot (bf16 preferred) -> (B, 1) f32."""
    B = img.shape[0]
    # Batch tile: as large as tile_b, but split into >=2 grid steps whenever possible so
    # the ("parallel",) axis can use both TensorCores on v7x. Multiple of 8 sublanes.
    half = ((-(-B // 2)) + 7) // 8 * 8
    tb = max(8, min(tile_b, half))
    num_tiles = -(-B // tb)

    resident = lambda shape: pl.BlockSpec(shape, lambda i: (0, 0))

    out = pl.pallas_call(
        _discriminator_kernel,
        out_shape=jax.ShapeDtypeStruct((num_tiles, 1, tb), jnp.float32),
        grid=(num_tiles,),
        in_specs=[
            pl.BlockSpec((tb, IMG_DIM), lambda i: (i, 0)),      # img tile (pipelined)
            pl.BlockSpec((tb, LABEL_DIM), lambda i: (i, 0)),    # label tile (pipelined)
            resident((IMG_DIM, HID_PAD)),                       # W1[:784]   (bf16)
            resident((LABEL_DIM, HID_PAD)),                     # W1[784:]   (bf16)
            resident((3, HID_PAD)),                             # [b1; gamma; beta] (f32)
            resident((8, HID_PAD)),                             # W2^T, zero-padded (f32)
            pl.BlockSpec(memory_space=pltpu.MemorySpace.SMEM),  # b2 scalar
        ],
        out_specs=pl.BlockSpec((None, 1, tb), lambda i: (i, 0, 0)),
        compiler_params=pltpu.CompilerParams(
            dimension_semantics=("parallel",)),
    )(img, label,
      kparams["w1_img"], kparams["w1_lab"], kparams["pack"],
      kparams["w2_t"], kparams["b2"])
    # Lane-major (num_tiles, 1, tb) -> (B, 1); the slice only trims the <tb padded
    # lanes of the last tile (a few hundred bytes), not a (B,128) buffer.
    return out.reshape(-1)[:B].reshape(B, OUT_DIM)


def init_params(key):
    """PyTorch nn.Linear defaults: U(-1/sqrt(fan_in), 1/sqrt(fan_in)); LN gamma=1, beta=0.
    Weights stored as (in, out) so the math is x @ W + b."""
    k1, k2, k3, k4 = jax.random.split(key, 4)
    bnd1 = 1.0 / jnp.sqrt(jnp.float32(IN_DIM))
    bnd2 = 1.0 / jnp.sqrt(jnp.float32(HID_DIM))
    return {
        "w1": jax.random.uniform(k1, (IN_DIM, HID_DIM), jnp.float32, -bnd1, bnd1),
        "b1": jax.random.uniform(k2, (HID_DIM,), jnp.float32, -bnd1, bnd1),
        "gamma": jnp.ones((HID_DIM,), jnp.float32),
        "beta": jnp.zeros((HID_DIM,), jnp.float32),
        "w2": jax.random.uniform(k3, (HID_DIM, OUT_DIM), jnp.float32, -bnd2, bnd2),
        "b2": jax.random.uniform(k4, (OUT_DIM,), jnp.float32, -bnd2, bnd2),
    }


def prepare_params(params):
    """One-time prep: split W1 at the img/label boundary, zero-pad 200->256, cast the big
    matmul weights to bf16, pack b1/gamma/beta into one resident block, and store W2
    transposed (lane-major output) with zero sublane padding."""
    pad_h = HID_PAD - HID_DIM
    w1 = params["w1"]
    pack = jnp.stack([
        jnp.pad(params["b1"], (0, pad_h)),
        jnp.pad(params["gamma"], (0, pad_h)),
        jnp.pad(params["beta"], (0, pad_h)),
    ]).astype(jnp.float32)                                          # (3, HID_PAD)
    w2_t = jnp.pad(params["w2"].T.astype(jnp.float32),
                   ((0, 8 - OUT_DIM), (0, pad_h)))                  # (8, HID_PAD), row 0 live
    return {
        "w1_img": jnp.pad(w1[:IMG_DIM], ((0, 0), (0, pad_h))).astype(jnp.bfloat16),
        "w1_lab": jnp.pad(w1[IMG_DIM:], ((0, 0), (0, pad_h))).astype(jnp.bfloat16),
        "pack": pack,
        "w2_t": w2_t,
        "b2": params["b2"].astype(jnp.float32),                     # (1,) -> SMEM scalar
    }


def _reference_forward(img, label, params):
    """Plain-JAX f32 reference matching the PyTorch module."""
    x = jnp.concatenate([img, label], axis=1).astype(jnp.float32)
    h = x @ params["w1"] + params["b1"]
    h = jnp.where(h > 0, h, LEAK * h)
    mean = jnp.mean(h, axis=-1, keepdims=True)
    var = jnp.mean((h - mean) ** 2, axis=-1, keepdims=True)
    h = (h - mean) / jnp.sqrt(var + LN_EPS)
    h = h * params["gamma"] + params["beta"]
    y = h @ params["w2"] + params["b2"]
    return jax.nn.sigmoid(y)


# TODO(synk): BCELoss / Adam training step (`work`) is host-side training logic, not part
# of the forward pass, and is intentionally not implemented as a kernel.

if __name__ == "__main__":
    key = jax.random.PRNGKey(0)
    k_params, k_data = jax.random.split(key, 2)

    params = init_params(k_params)
    kparams = prepare_params(params)

    # B=8: single tile; B=200: two ragged tiles (exercises OOB-row masking + slice).
    for B in (8, 200):
        kb_img, kb_lab = jax.random.split(jax.random.fold_in(k_data, B))
        img_f32 = jax.random.uniform(kb_img, (B, IMG_DIM), jnp.float32)  # MNIST-like pixels
        label_idx = jax.random.randint(kb_lab, (B,), 0, LABEL_DIM)
        label = jax.nn.one_hot(label_idx, LABEL_DIM, dtype=jnp.float32)

        # Producer-side bf16: the kernel's first matmul is bf16 anyway, so feeding bf16
        # halves the dominant img HBM traffic (no wrapper-side cast pass).
        img_bf = img_f32.astype(jnp.bfloat16)
        lab_bf = label.astype(jnp.bfloat16)

        out = jax.block_until_ready(discriminator_forward(img_bf, lab_bf, kparams))

        # Reference uses the same bf16-rounded image so only kernel math precision differs.
        ref = _reference_forward(img_bf.astype(jnp.float32), label, params)
        assert out.shape == (B, OUT_DIM), out.shape
        # bf16 first matmul => relaxed tolerance vs f32 reference
        assert jnp.allclose(out, ref, atol=2e-2, rtol=0.0), \
            float(jnp.max(jnp.abs(out - ref)))

    print("KERNEL_OK")
</pallas_src>

<mosaic_0001>
module attributes {stable_mosaic.version = 11 : i64} {
  func.func @_discriminator_kernel(%arg0: i32, %arg1: memref<8x784xbf16, #tpu.memory_space<vmem>>, %arg2: memref<8x10xbf16, #tpu.memory_space<vmem>>, %arg3: memref<784x256xbf16, #tpu.memory_space<vmem>>, %arg4: memref<10x256xbf16, #tpu.memory_space<vmem>>, %arg5: memref<3x256xf32, #tpu.memory_space<vmem>>, %arg6: memref<8x256xf32, #tpu.memory_space<vmem>>, %arg7: memref<1xf32, #tpu.memory_space<smem>>, %arg8: memref<1x1x8xf32, #tpu.memory_space<vmem>>) attributes {dimension_semantics = [#tpu.dimension_semantics<parallel>], iteration_bounds = array<i64: 1>, scalar_prefetch = 0 : i64, scratch_operands = 0 : i64, tpu.core_type = #tpu.core_type<tc>, window_params = [{transform_indices = @transform_0, window_bounds = array<i64: 8, 784>}, {transform_indices = @transform_1, window_bounds = array<i64: 8, 10>}, {pipeline_mode = #tpu.pipeline_mode<synchronous>, transform_indices = @transform_2, window_bounds = array<i64: 784, 256>}, {pipeline_mode = #tpu.pipeline_mode<synchronous>, transform_indices = @transform_3, window_bounds = array<i64: 10, 256>}, {pipeline_mode = #tpu.pipeline_mode<synchronous>, transform_indices = @transform_4, window_bounds = array<i64: 3, 256>}, {pipeline_mode = #tpu.pipeline_mode<synchronous>, transform_indices = @transform_5, window_bounds = array<i64: 8, 256>}, {transform_indices = @transform_6, window_bounds = array<i64: 1>}, {transform_indices = @transform_7, window_bounds = array<i64: 1, 1, 8>}]} {
    %c0 = arith.constant 0 : index
    %c0_0 = arith.constant 0 : index
    %0 = vector.load %arg1[%c0, %c0_0] : memref<8x784xbf16, #tpu.memory_space<vmem>>, vector<8x784xbf16>
    %c0_1 = arith.constant 0 : index
    %c0_2 = arith.constant 0 : index
    %1 = vector.load %arg2[%c0_1, %c0_2] : memref<8x10xbf16, #tpu.memory_space<vmem>>, vector<8x10xbf16>
    %c0_3 = arith.constant 0 : index
    %c0_4 = arith.constant 0 : index
    %2 = vector.load %arg3[%c0_3, %c0_4] : memref<784x256xbf16, #tpu.memory_space<vmem>>, vector<784x256xbf16>
    %cst = arith.constant dense<0.000000e+00> : vector<8x256xf32>
    %3 = tpu.matmul %0, %2, %cst {dimension_numbers = #tpu.dot_dimension_numbers<[1], [0], [0], [1], [0, 0, 1, 1], [], []>} : vector<8x784xbf16>, vector<784x256xbf16>, vector<8x256xf32> -> vector<8x256xf32>
    %c0_5 = arith.constant 0 : index
    %c0_6 = arith.constant 0 : index
    %4 = vector.load %arg4[%c0_5, %c0_6] : memref<10x256xbf16, #tpu.memory_space<vmem>>, vector<10x256xbf16>
    %cst_7 = arith.constant dense<0.000000e+00> : vector<8x256xf32>
    %5 = tpu.matmul %1, %4, %cst_7 {dimension_numbers = #tpu.dot_dimension_numbers<[1], [0], [0], [1], [0, 0, 1, 1], [], []>} : vector<8x10xbf16>, vector<10x256xbf16>, vector<8x256xf32> -> vector<8x256xf32>
    %6 = arith.addf %3, %5 : vector<8x256xf32>
    %c0_8 = arith.constant 0 : index
    %c0_9 = arith.constant 0 : index
    %7 = vector.load %arg5[%c0_8, %c0_9] : memref<3x256xf32, #tpu.memory_space<vmem>>, vector<1x256xf32>
    %8 = vector.broadcast %7 : vector<1x256xf32> to vector<8x256xf32>
    %9 = arith.addf %6, %8 : vector<8x256xf32>
    %cst_10 = arith.constant 0.000000e+00 : f32
    %10 = vector.broadcast %cst_10 : f32 to vector<8x256xf32>
    %11 = arith.cmpf ogt, %9, %10 : vector<8x256xf32>
    %cst_11 = arith.constant 2.000000e-02 : f32
    %12 = vector.broadcast %cst_11 : f32 to vector<8x256xf32>
    %13 = arith.mulf %12, %9 : vector<8x256xf32>
    %14 = arith.select %11, %9, %13 : vector<8x256xi1>, vector<8x256xf32>
    %15 = tpu.iota {dimensions = array<i32: 1>} : vector<1x256xi32>
    %c200_i32 = arith.constant 200 : i32
    %16 = vector.broadcast %c200_i32 : i32 to vector<1x256xi32>
    %17 = arith.cmpi slt, %15, %16 : vector<1x256xi32>
    %cst_12 = arith.constant dense<0.000000e+00> : vector<8xf32>
    %18 = vector.multi_reduction <add>, %14, %cst_12 [1] : vector<8x256xf32> to vector<8xf32>
    %19 = vector.shape_cast %18 : vector<8xf32> to vector<8x1xf32>
    %cst_13 = arith.constant 5.000000e-03 : f32
    %20 = vector.broadcast %cst_13 : f32 to vector<8x1xf32>
    %21 = arith.mulf %19, %20 : vector<8x1xf32>
    %22 = vector.broadcast %21 : vector<8x1xf32> to vector<8x256xf32>
    %23 = arith.subf %14, %22 : vector<8x256xf32>
    %cst_14 = arith.constant 0.000000e+00 : f32
    %24 = vector.shape_cast %17 : vector<1x256xi1> to vector<1x256xi1>
    %25 = vector.broadcast %24 : vector<1x256xi1> to vector<8x256xi1>
    %26 = vector.broadcast %cst_14 : f32 to vector<8x256xf32>
    %27 = arith.select %25, %23, %26 : vector<8x256xi1>, vector<8x256xf32>
    %28 = arith.mulf %27, %27 : vector<8x256xf32>
    %cst_15 = arith.constant dense<0.000000e+00> : vector<8xf32>
    %29 = vector.multi_reduction <add>, %28, %cst_15 [1] : vector<8x256xf32> to vector<8xf32>
    %30 = vector.shape_cast %29 : vector<8xf32> to vector<8x1xf32>
    %cst_16 = arith.constant 5.000000e-03 : f32
    %31 = vector.broadcast %cst_16 : f32 to vector<8x1xf32>
    %32 = arith.mulf %30, %31 : vector<8x1xf32>
    %33 = vector.broadcast %21 : vector<8x1xf32> to vector<8x256xf32>
    %34 = arith.subf %14, %33 : vector<8x256xf32>
    %cst_17 = arith.constant 9.99999974E-6 : f32
    %35 = vector.broadcast %cst_17 : f32 to vector<8x1xf32>
    %36 = arith.addf %32, %35 : vector<8x1xf32>
    %37 = math.rsqrt %36 : vector<8x1xf32>
    %38 = vector.broadcast %37 : vector<8x1xf32> to vector<8x256xf32>
    %39 = arith.mulf %34, %38 : vector<8x256xf32>
    %c1 = arith.constant 1 : index
    %c0_18 = arith.constant 0 : index
    %40 = vector.load %arg5[%c1, %c0_18] : memref<3x256xf32, #tpu.memory_space<vmem>>, vector<1x256xf32>
    %41 = vector.broadcast %40 : vector<1x256xf32> to vector<8x256xf32>
    %42 = arith.mulf %39, %41 : vector<8x256xf32>
    %c2 = arith.constant 2 : index
    %c0_19 = arith.constant 0 : index
    %43 = vector.load %arg5[%c2, %c0_19] : memref<3x256xf32, #tpu.memory_space<vmem>>, vector<1x256xf32>
    %44 = vector.broadcast %43 : vector<1x256xf32> to vector<8x256xf32>
    %45 = arith.addf %42, %44 : vector<8x256xf32>
    %c0_20 = arith.constant 0 : index
    %c0_21 = arith.constant 0 : index
    %46 = vector.load %arg6[%c0_20, %c0_21] : memref<8x256xf32, #tpu.memory_space<vmem>>, vector<8x256xf32>
    %47 = tpu.transpose %45, [1, 0] : vector<8x256xf32> -> vector<256x8xf32>
    %cst_22 = arith.constant dense<0.000000e+00> : vector<8x8xf32>
    %48 = tpu.matmul %46, %47, %cst_22 {dimension_numbers = #tpu.dot_dimension_numbers<[1], [0], [0], [1], [0, 0, 1, 1], [], []>} : vector<8x256xf32>, vector<256x8xf32>, vector<8x8xf32> -> vector<8x8xf32>
    %49 = vector.extract_strided_slice %48 {offsets = [0, 0], sizes = [1, 8], strides = [1, 1]} : vector<8x8xf32> to vector<1x8xf32>
    %c0_23 = arith.constant 0 : index
    %50 = memref.load %arg7[%c0_23] : memref<1xf32, #tpu.memory_space<smem>>
    %51 = vector.broadcast %50 : f32 to vector<1x8xf32>
    %52 = arith.addf %49, %51 : vector<1x8xf32>
    %cst_24 = arith.constant 0.000000e+00 : f32
    %53 = vector.broadcast %cst_24 : f32 to vector<1x8xf32>
    %54 = arith.subf %53, %52 : vector<1x8xf32>
    %55 = math.exp %54 : vector<1x8xf32>
    %cst_25 = arith.constant 1.000000e+00 : f32
    %56 = vector.broadcast %cst_25 : f32 to vector<1x8xf32>
    %57 = arith.addf %56, %55 : vector<1x8xf32>
    %cst_26 = arith.constant 1.000000e+00 : f32
    %58 = vector.broadcast %cst_26 : f32 to vector<1x8xf32>
    %59 = arith.divf %58, %57 : vector<1x8xf32>
    %c0_27 = arith.constant 0 : index
    %c0_28 = arith.constant 0 : index
    %c0_29 = arith.constant 0 : index
    %60 = vector.load %arg8[%c0_27, %c0_28, %c0_29] : memref<1x1x8xf32, #tpu.memory_space<vmem>>, vector<1x1x8xf32>
    %61 = vector.shape_cast %60 : vector<1x1x8xf32> to vector<1x8xf32>
    %62 = vector.shape_cast %59 : vector<1x8xf32> to vector<1x1x8xf32>
    tpu.vector_store %arg8[%c0_27, %c0_28, %c0_29], %62 {strides = array<i32>} : memref<1x1x8xf32, #tpu.memory_space<vmem>>, vector<1x1x8xf32>,
    return
  }
  func.func @transform_0(%arg0: i32) -> (i32, i32) {
    %c0_i32 = arith.constant 0 : i32
    %c0_i32_0 = arith.constant 0 : i32
    return %arg0, %c0_i32 : i32, i32
  }
  func.func @transform_1(%arg0: i32) -> (i32, i32) {
    %c0_i32 = arith.constant 0 : i32
    %c0_i32_0 = arith.constant 0 : i32
    return %arg0, %c0_i32 : i32, i32
  }
  func.func @transform_2(%arg0: i32) -> (i32, i32) {
    %c0_i32 = arith.constant 0 : i32
    %c0_i32_0 = arith.constant 0 : i32
    %c0_i32_1 = arith.constant 0 : i32
    return %c0_i32, %c0_i32_0 : i32, i32
  }
  func.func @transform_3(%arg0: i32) -> (i32, i32) {
    %c0_i32 = arith.constant 0 : i32
    %c0_i32_0 = arith.constant 0 : i32
    %c0_i32_1 = arith.constant 0 : i32
    return %c0_i32, %c0_i32_0 : i32, i32
  }
  func.func @transform_4(%arg0: i32) -> (i32, i32) {
    %c0_i32 = arith.constant 0 : i32
    %c0_i32_0 = arith.constant 0 : i32
    %c0_i32_1 = arith.constant 0 : i32
    return %c0_i32, %c0_i32_0 : i32, i32
  }
  func.func @transform_5(%arg0: i32) -> (i32, i32) {
    %c0_i32 = arith.constant 0 : i32
    %c0_i32_0 = arith.constant 0 : i32
    %c0_i32_1 = arith.constant 0 : i32
    return %c0_i32, %c0_i32_0 : i32, i32
  }
  func.func @transform_6(%arg0: i32) -> i32 {
    %c0_i32 = arith.constant 0 : i32
    %c0_i32_0 = arith.constant 0 : i32
    return %c0_i32 : i32
  }
  func.func @transform_7(%arg0: i32) -> (i32, i32, i32) {
    %c0_i32 = arith.constant 0 : i32
    %c0_i32_0 = arith.constant 0 : i32
    %c0_i32_1 = arith.constant 0 : i32
    return %arg0, %c0_i32, %c0_i32_0 : i32, i32, i32
  }
}

</mosaic_0001>

<bundles_post_ra>
// kernel: discriminator_forward.1
= control target key start
LH: loop header
LB: loop body
LE: loop exit
PB: predicated region body
PF: predicated region fallthrough
CT: control target
= control target key end

     0   :  { %13 = vsyncpa [#allocation4], 0  ;;  %s1680_s0 = inlined_call_operand.hbm [shape: bf16[8,784], index: 0, kind: input, shape index: {}]   ;;  %s1681_s1 = inlined_call_operand.hbm [shape: bf16[8,10], index: 1, kind: input, shape index: {}]   ;;  %s1682_s2 = inlined_call_operand.hbm [shape: bf16[784,256], index: 2, kind: input, shape index: {}]   ;;  %s1683_s3 = inlined_call_operand.vmem [shape: bf16[10,256], index: 3, kind: input, shape index: {}]   ;;  %s1684_s4 = inlined_call_operand.hbm [shape: f32[3,256], index: 4, kind: input, shape index: {}]   ;;  %s1685_s5 = inlined_call_operand.hbm [shape: f32[8,256], index: 5, kind: input, shape index: {}]   ;;  %s1686_s6 = inlined_call_operand.<no memory space> [shape: f32[1], index: 6, kind: input, shape index: {}]   ;;  %s1687_s7 = inlined_call_operand.hbm [shape: f32[1,1,8], index: 7, kind: output, shape index: {}]  }
   0x1   :  { %14 = vsyncpa [#allocation7], 0 }
   0x2   :  { %15 = vsyncpa [#allocation10], 0 }
   0x3   :  { %16 = vsyncpa [#allocation5], 0  ;;  %s1535_s24 = smov [#allocation6]   ;;  %s1536_s26 = smov [#allocation9]  }
   0x4   :  { %s33_s25 = sshll.u32 %s1535_s24, 4  ;;  %s57_s27 = sshll.u32 %s1536_s26, 4  ;;  %s34_s25 = int_to_ptr.vmem [resolvable:$true] %s33_s25  ;;  %s58_s27 = int_to_ptr.vmem [resolvable:$true] %s57_s27 }
   0x5   :  { %s1395_s30 = scalar_lea.hbm %s1681_s1, 64 }
   0x6   :  { %p1396_p0 = scmp.ne.s32.totalorder %s1681_s1, %s1395_s30  ;;  %p1399_p1 = scmp.lt.u32.totalorder %s1395_s30, %s1681_s1 }
   0x8   :  { %p1401_p2 = pnand %p1399_p1, %p1396_p0 }
   0xa   :  { %1404 = shalt.err (!%p1401_p2)
}
   0xb   :  { %s1405_s12 = scalar_lea.vmem %s34_s25, 64  ;;  %p1410_p4 = scmp.lt.s32.totalorder %s34_s25, %s34_s25 }
   0xc   :  { %p1406_p3 = scmp.ne.s32.totalorder %s34_s25, %s1405_s12  ;;  %p1411_p5 = scmp.lt.s32.totalorder %s1405_s12, %s1405_s12 }
   0xe   :  { %p1412_p6 = por %p1411_p5, %p1410_p4 }
  0x10   :  { %p1413_p7 = pnand %p1412_p6, %p1406_p3 }
  0x12   :  { %1416 = shalt.err (!%p1413_p7)
}
  0x13   :  { %36 = dma.hbm_to_vmem [thread:$0]  %s1681_s1, 64, %s34_s25, [#allocation7]  }
  0x14   :  { %s1417_s17 = scalar_lea.hbm %s1684_s4, 128 }
  0x15   :  { %p1418_p8 = scmp.ne.s32.totalorder %s1684_s4, %s1417_s17  ;;  %p1421_p9 = scmp.lt.u32.totalorder %s1417_s17, %s1684_s4 }
  0x17   :  { %p1423_p10 = pnand %p1421_p9, %p1418_p8 }
  0x19   :  { %1426 = shalt.err (!%p1423_p10)
}
  0x1a   :  { %s1427_s22 = scalar_lea.vmem %s58_s27, 128  ;;  %p1432_p12 = scmp.lt.s32.totalorder %s58_s27, %s58_s27 }
  0x1b   :  { %p1428_p11 = scmp.ne.s32.totalorder %s58_s27, %s1427_s22  ;;  %p1433_p13 = scmp.lt.s32.totalorder %s1427_s22, %s1427_s22 }
  0x1d   :  { %p1434_p0 = por %p1433_p13, %p1432_p12 }
  0x1f   :  { %p1435_p1 = pnand %p1434_p0, %p1428_p11 }
  0x21   :  { %1438 = shalt.err (!%p1435_p1)
}
  0x22   :  { %60 = dma.hbm_to_vmem [thread:$0]  %s1684_s4, 128, %s58_s27, [#allocation10]  }
  0x23   :  { %s1537_s24 = smov [#allocation3]   ;;  %s1538_s26 = smov [#allocation8]  }
  0x24   :  { %s23_s25 = sshll.u32 %s1537_s24, 4  ;;  %s42_s28 = sshll.u32 %s1538_s26, 4  ;;  %s24_s25 = int_to_ptr.vmem [resolvable:$true] %s23_s25  ;;  %s1608_s28 = int_to_ptr.vmem [resolvable:$true] %s42_s28 }
  0x25   :  { %s1439_s8 = scalar_lea.hbm %s1680_s0, 448 }
  0x26   :  { %p1440_p2 = scmp.ne.s32.totalorder %s1680_s0, %s1439_s8  ;;  %p1443_p3 = scmp.lt.u32.totalorder %s1439_s8, %s1680_s0 }
  0x28   :  { %p1445_p4 = pnand %p1443_p3, %p1440_p2 }
  0x2a   :  { %1448 = shalt.err (!%p1445_p4)
}
  0x2b   :  { %s1449_s4 = scalar_lea.vmem %s24_s25, 448  ;;  %p1454_p6 = scmp.lt.s32.totalorder %s24_s25, %s24_s25 }
  0x2c   :  { %p1450_p5 = scmp.ne.s32.totalorder %s24_s25, %s1449_s4  ;;  %p1455_p7 = scmp.lt.s32.totalorder %s1449_s4, %s1449_s4 }
  0x2e   :  { %p1456_p8 = por %p1455_p7, %p1454_p6 }
  0x30   :  { %p1457_p9 = pnand %p1456_p8, %p1450_p5 }
  0x32   :  { %1460 = shalt.err (!%p1457_p9)
}
  0x33   :  { %26 = dma.hbm_to_vmem [thread:$0]  %s1680_s0, 448, %s24_s25, [#allocation4]  }
  0x34   :  { %s1461_s16 = scalar_lea.hbm %s1682_s2, 12544 }
  0x35   :  { %p1462_p10 = scmp.ne.s32.totalorder %s1682_s2, %s1461_s16  ;;  %p1465_p11 = scmp.lt.u32.totalorder %s1461_s16, %s1682_s2 }
  0x37   :  { %p1467_p12 = pnand %p1465_p11, %p1462_p10 }
  0x39   :  { %1470 = shalt.err (!%p1467_p12)
}
  0x3a   :  { %s1471_s21 = scalar_lea.vmem %s1608_s28, 12544  ;;  %p1476_p0 = scmp.lt.s32.totalorder %s1608_s28, %s1608_s28 }
  0x3b   :  { %p1472_p13 = scmp.ne.s32.totalorder %s1608_s28, %s1471_s21  ;;  %p1477_p1 = scmp.lt.s32.totalorder %s1471_s21, %s1471_s21 }
  0x3d   :  { %p1478_p2 = por %p1477_p1, %p1476_p0 }
  0x3f   :  { %p1479_p3 = pnand %p1478_p2, %p1472_p13 }
  0x41   :  { %1482 = shalt.err (!%p1479_p3)
}
  0x42   :  { %s1539_s0 = smov 128   ;;  %s1540_s22 = smov 8  }
  0x43   :  { %48 = dma.hbm_to_vmem [thread:$0]  %s1682_s2, 12544, %s1608_s28, [#allocation7], %s1539_s0, %s1539_s0, %s1540_s22  }
  0x44   :  { %s1541_s24 = smov [#allocation11]   ;;  %s1483_s30 = scalar_lea.hbm %s1685_s5, 256 }
  0x45   :  { %s67_s25 = sshll.u32 %s1541_s24, 4  ;;  %p1484_p4 = scmp.ne.s32.totalorder %s1685_s5, %s1483_s30  ;;  %s68_s25 = int_to_ptr.vmem [resolvable:$true] %s67_s25 }
  0x46   :  { %p1487_p5 = scmp.lt.u32.totalorder %s1483_s30, %s1685_s5 }
  0x48   :  { %p1489_p6 = pnand %p1487_p5, %p1484_p4 }
  0x4a   :  { %1492 = shalt.err (!%p1489_p6)
}
  0x4b   :  { %s1493_s12 = scalar_lea.vmem %s68_s25, 256  ;;  %p1498_p8 = scmp.lt.s32.totalorder %s68_s25, %s68_s25 }
  0x4c   :  { %p1494_p7 = scmp.ne.s32.totalorder %s68_s25, %s1493_s12  ;;  %p1499_p9 = scmp.lt.s32.totalorder %s1493_s12, %s1493_s12 }
  0x4e   :  { %p1500_p10 = por %p1499_p9, %p1498_p8 }
  0x50   :  { %p1501_p11 = pnand %p1500_p10, %p1494_p7 }
  0x52   :  { %1504 = shalt.err (!%p1501_p11)
}
  0x53   :  { %70 = dma.hbm_to_vmem [thread:$0]  %s1685_s5, 256, %s68_s25, [#allocation10]  }
  0x54   :  { %1527 = dma.done.wait [#allocation4], 448  }
  0x55   :  { %1528 = vsyncadd [#allocation4], 4294966848 }
  0x56   :  { %1529 = dma.done.wait [#allocation7], 12608  }
  0x57   :  { %1530 = vsyncadd [#allocation7], 4294954688 }
  0x58   :  { %1531 = dma.done.wait [#allocation10], 384  }
  0x59   :  { %1532 = vsyncadd [#allocation10], 4294966912  ;;  %v1542_v0 = vmov 0   ;;  %vm206_vm0 = vcmask 1044480   ;;  %v1234_v2 = vld [vmem:[#allocation8 + $0x4] ss:$8 sps:$4 sm:$0xff]  }
  0x5a   :  { %245 = vmatprep.mubr.bf16.mxu0 %v1542_v0  ;;  %v1232_v1 = vld [vmem:[%s1683_s3 + $0x4] ss:$8 sps:$4 sm:$0x1f]   ;;  %v1236_v3 = vld [vmem:[%s1683_s3] ss:$8 sps:$4 sm:$0x1f]   ;;  %772 = vmatprep.subr.bf16.mxu1 %v1234_v2 }
  0x5b   :  { %1115 = vmatprep.subr.msk.bf16.mxu0 %vm206_vm0, %v1232_v1  ;;  %v1237_v4 = vld [vmem:[#allocation8] ss:$8 sps:$4 sm:$0xff]   ;;  %v1238_v5 = vld [vmem:[#allocation8 + $0x14] ss:$8 sps:$4 sm:$0xff]   ;;  %v208_v6 = vsel %vm206_vm0, %v1236_v3, 0  ;;  %vm202_vm1 = vcmask 80896  }
  0x5c   :  { %773 = vmatpush1.bf16.msra.mxu1 %v1237_v4  ;;  %v1240_v7 = vld [vmem:[#allocation8 + $0x100] ss:$8 sps:$4 sm:$0xff]   ;;  %v1242_v8 = vld [vmem:[#allocation8 + $0x104] ss:$8 sps:$4 sm:$0xff]   ;;  %214 = vmatpush1.bf16.msra.mxu0 %v208_v6  ;;  %v93_v9 = vld [vmem:[#allocation6] sm:$0xf] }
  0x5d   :  { %774 = vmatprep.subr.bf16.mxu1 %v1238_v5  ;;  %v1243_v10 = vld [vmem:[#allocation8 + $0x10] ss:$8 sps:$4 sm:$0xff]   ;;  %813 = vmatprep.subr.bf16.mxu0 %v1242_v8  ;;  %v1244_v11 = vld [vmem:[#allocation8 + $0x24] ss:$8 sps:$4 sm:$0xff]   ;;  %v1248_v13 = vld [vmem:[#allocation8 + $0x114] ss:$8 sps:$4 sm:$0xff]  }
  0x5e   :  { %v1246_v12 = vld [vmem:[#allocation8 + $0x110] ss:$8 sps:$4 sm:$0xff]   ;;  %v1249_v14 = vld [vmem:[#allocation8 + $0x20] ss:$8 sps:$4 sm:$0xff]   ;;  %v1250_v15 = vld [vmem:[#allocation8 + $0x34] ss:$8 sps:$4 sm:$0xff]  }
  0x5f   :  { %1116 = vmatmul.mubr.msk.bf16.vlgmr.msra.gmra.mrb[0].mxu0 %vm202_vm1, %v93_v9  ;;  %v1254_v16 = vld [vmem:[#allocation8 + $0x124] ss:$8 sps:$4 sm:$0xff]   ;;  %v1255_v17 = vld [vmem:[#allocation8 + $0x30] ss:$8 sps:$4 sm:$0xff]   ;;  %v1252_v18 = vld [vmem:[#allocation8 + $0x120] ss:$8 sps:$4 sm:$0xff]  }
  0x60   :  { %775 = vmatpush1.bf16.msra.mxu1 %v1243_v10  ;;  %814 = vmatpush1.bf16.msra.mxu0 %v1240_v7  ;;  %v1256_v19 = vld [vmem:[#allocation8 + $0x44] ss:$8 sps:$4 sm:$0xff]   ;;  %v1260_v20 = vld [vmem:[#allocation8 + $0x134] ss:$8 sps:$4 sm:$0xff]   ;;  %v1258_v21 = vld [vmem:[#allocation8 + $0x130] ss:$8 sps:$4 sm:$0xff]  }
  0x61   :  { %776 = vmatprep.subr.bf16.mxu1 %v1244_v11  ;;  %815 = vmatprep.subr.bf16.mxu0 %v1248_v13  ;;  %v1261_v22 = vld [vmem:[#allocation8 + $0x40] ss:$8 sps:$4 sm:$0xff]   ;;  %v1262_v23 = vld [vmem:[#allocation8 + $0x54] ss:$8 sps:$4 sm:$0xff]   ;;  %v1266_v24 = vld [vmem:[#allocation8 + $0x144] ss:$8 sps:$4 sm:$0xff]  }
  0x62   :  { %v1267_v25 = vld [vmem:[#allocation8 + $0x50] ss:$8 sps:$4 sm:$0xff]   ;;  %v1264_v26 = vld [vmem:[#allocation8 + $0x140] ss:$8 sps:$4 sm:$0xff]   ;;  %v1268_v27 = vld [vmem:[#allocation8 + $0x64] ss:$8 sps:$4 sm:$0xff]  }
  0x63   :  { %v1272_v28 = vld [vmem:[#allocation8 + $0x154] ss:$8 sps:$4 sm:$0xff]   ;;  %v1270_v29 = vld [vmem:[#allocation8 + $0x150] ss:$8 sps:$4 sm:$0xff]   ;;  %v1273_v30 = vld [vmem:[#allocation8 + $0x60] ss:$8 sps:$4 sm:$0xff]  }
  0x64   :  { %777 = vmatpush1.bf16.msra.mxu1 %v1249_v14  ;;  %816 = vmatpush1.bf16.msra.mxu0 %v1246_v12  ;;  %v1274_v31 = vld [vmem:[#allocation8 + $0x74] ss:$8 sps:$4 sm:$0xff]   ;;  %v1278_v32 = vld [vmem:[#allocation8 + $0x164] ss:$8 sps:$4 sm:$0xff]   ;;  %v1279_v33 = vld [vmem:[#allocation8 + $0x70] ss:$8 sps:$4 sm:$0xff]  }
  0x65   :  { %778 = vmatprep.subr.bf16.mxu1 %v1250_v15  ;;  %817 = vmatprep.subr.bf16.mxu0 %v1254_v16  ;;  %v1276_v34 = vld [vmem:[#allocation8 + $0x160] ss:$8 sps:$4 sm:$0xff]   ;;  %v1280_v35 = vld [vmem:[#allocation8 + $0x84] ss:$8 sps:$4 sm:$0xff]   ;;  %v1284_v36 = vld [vmem:[#allocation8 + $0x174] ss:$8 sps:$4 sm:$0xff]  }
  0x66   :  { %v1282_v37 = vld [vmem:[#allocation8 + $0x170] ss:$8 sps:$4 sm:$0xff]   ;;  %v1285_v38 = vld [vmem:[#allocation8 + $0x80] ss:$8 sps:$4 sm:$0xff]   ;;  %v1286_v39 = vld [vmem:[#allocation8 + $0x94] ss:$8 sps:$4 sm:$0xff]  }
  0x67   :  { %v1290_v40 = vld [vmem:[#allocation8 + $0x184] ss:$8 sps:$4 sm:$0xff]   ;;  %v1291_v41 = vld [vmem:[#allocation8 + $0x90] ss:$8 sps:$4 sm:$0xff]   ;;  %v1288_v42 = vld [vmem:[#allocation8 + $0x180] ss:$8 sps:$4 sm:$0xff]  }
  0x68   :  { %779 = vmatpush1.bf16.msra.mxu1 %v1255_v17  ;;  %818 = vmatpush1.bf16.msra.mxu0 %v1252_v18  ;;  %v1292_v43 = vld [vmem:[#allocation8 + $0xa4] ss:$8 sps:$4 sm:$0xff]   ;;  %v1296_v44 = vld [vmem:[#allocation8 + $0x194] ss:$8 sps:$4 sm:$0xff]   ;;  %v1294_v45 = vld [vmem:[#allocation8 + $0x190] ss:$8 sps:$4 sm:$0xff]  }
  0x69   :  { %780 = vmatprep.subr.bf16.mxu1 %v1256_v19  ;;  %819 = vmatprep.subr.bf16.mxu0 %v1260_v20  ;;  %v1297_v46 = vld [vmem:[#allocation8 + $0xa0] ss:$8 sps:$4 sm:$0xff]   ;;  %v1298_v47 = vld [vmem:[#allocation8 + $0xb4] ss:$8 sps:$4 sm:$0xff]   ;;  %v1302_v48 = vld [vmem:[#allocation8 + $0x1a4] ss:$8 sps:$4 sm:$0xff]  }
  0x6a   :  { %v89_v49 = vld [vmem:[#allocation3] sm:$0xff]  ;;  %v1303_v51 = vld [vmem:[#allocation8 + $0xb0] ss:$8 sps:$4 sm:$0xff]   ;;  %v1308_v54 = vld [vmem:[#allocation8 + $0x1b4] ss:$8 sps:$4 sm:$0xff]   ;;  %vm768_vm2 = vcmask 130048  }
  0x6b   :  { %v1300_v50 = vld [vmem:[#allocation8 + $0x1a0] ss:$8 sps:$4 sm:$0xff]   ;;  %v1118_v52 = vcombine.high %v89_v49, %v89_v49  ;;  %v1304_v53 = vld [vmem:[#allocation8 + $0xc4] ss:$8 sps:$4 sm:$0xff]   ;;  %v1306_v57 = vld [vmem:[#allocation8 + $0x1b0] ss:$8 sps:$4 sm:$0xff]   ;;  %v1117_v10 = vcombine.low %v89_v49, %v89_v49 }
  0x6c   :  { %781 = vmatpush1.bf16.msra.mxu1 %v1261_v22  ;;  %820 = vmatpush1.bf16.msra.mxu0 %v1258_v21  ;;  %v90_v55 = vld [vmem:[#allocation3 + $0x8] sm:$0xff]  ;;  %v1310_v59 = vld [vmem:[#allocation8 + $0xd4] ss:$8 sps:$4 sm:$0xff]   ;;  %v1315_v62 = vld [vmem:[#allocation8 + $0xd0] ss:$8 sps:$4 sm:$0xff]   ;;  %s1543_s15 = smov [#allocation12]  }
  0x6d   :  { %782 = vmatprep.subr.bf16.mxu1 %v1262_v23  ;;  %821 = vmatprep.subr.bf16.mxu0 %v1266_v24  ;;  %v1120_v56 = vcombine.high %v90_v55, %v90_v55  ;;  %v1309_v58 = vld [vmem:[#allocation8 + $0xc0] ss:$8 sps:$4 sm:$0xff]   ;;  %v1314_v60 = vld [vmem:[#allocation8 + $0x1c4] ss:$8 sps:$4 sm:$0xff]   ;;  %v1320_v1 = vld [vmem:[#allocation8 + $0x1d4] ss:$8 sps:$4 sm:$0xff]   ;;  %v1119_v16 = vcombine.low %v90_v55, %v90_v55 }
  0x6e   :  { %804 = vmatprep.mubr.bf16.mxu1 %v1118_v52  ;;  %v1312_v61 = vld [vmem:[#allocation8 + $0x1c0] ss:$8 sps:$4 sm:$0xff]   ;;  %v1316_v63 = vld [vmem:[#allocation8 + $0xe4] ss:$8 sps:$4 sm:$0xff]   ;;  %v1318_v2 = vld [vmem:[#allocation8 + $0x1d0] ss:$8 sps:$4 sm:$0xff]  }
  0x6f   :  { %845 = vmatprep.mubr.bf16.mxu0 %v1120_v56  ;;  %v1321_v3 = vld [vmem:[#allocation8 + $0xe0] ss:$8 sps:$4 sm:$0xff]   ;;  %v1322_v4 = vld [vmem:[#allocation8 + $0xf4] ss:$8 sps:$4 sm:$0xff]   ;;  %v1326_v5 = vld [vmem:[#allocation8 + $0x1e4] ss:$8 sps:$4 sm:$0xff]  }
  0x70   :  { %783 = vmatpush1.bf16.msra.mxu1 %v1267_v25  ;;  %822 = vmatpush1.bf16.msra.mxu0 %v1264_v26  ;;  %v1324_v6 = vld [vmem:[#allocation8 + $0x1e0] ss:$8 sps:$4 sm:$0xff]   ;;  %v1327_v7 = vld [vmem:[#allocation8 + $0xf0] ss:$8 sps:$4 sm:$0xff]   ;;  %v1335_v8 = vld [vmem:[#allocation8 + $0x204] ss:$8 sps:$4 sm:$0xff]  }
  0x71   :  { %784 = vmatprep.subr.bf16.mxu1 %v1268_v27  ;;  %823 = vmatprep.subr.bf16.mxu0 %v1272_v28  ;;  %v1332_v9 = vld [vmem:[#allocation8 + $0x1f4] ss:$8 sps:$4 sm:$0xff]   ;;  %v1330_v11 = vld [vmem:[#allocation8 + $0x1f0] ss:$8 sps:$4 sm:$0xff]   ;;  %v1333_v12 = vld [vmem:[#allocation8 + $0x200] ss:$8 sps:$4 sm:$0xff]  }
  0x72   :  { %v1340_v13 = vld [vmem:[#allocation8 + $0x214] ss:$8 sps:$4 sm:$0xff]   ;;  %v1382_v14 = vld [vmem:[#allocation8 + $0x304] ss:$8 sps:$4 sm:$0xff]   ;;  %v1338_v17 = vld [vmem:[#allocation8 + $0x210] ss:$8 sps:$4 sm:$0xff]  }
  0x73   :  { %v1658_v15 = vld [vmem:[#allocation3 + $0x10] sm:$0xff]  ;;  %v1343_v19 = vld [vmem:[#allocation8 + $0x224] ss:$8 sps:$4 sm:$0xff]   ;;  %v1380_v20 = vld [vmem:[#allocation8 + $0x300] ss:$8 sps:$4 sm:$0xff]   ;;  %s1102_s16 = sshll.u32 %s1543_s15, 4  ;;  %s1103_s16 = int_to_ptr.vmem [resolvable:$true] %s1102_s16 }
  0x74   :  { %785 = vmatpush1.bf16.msra.mxu1 %v1273_v30  ;;  %824 = vmatpush1.bf16.msra.mxu0 %v1270_v29  ;;  %v1122_v18 = vcombine.high %v1658_v15, %v1658_v15  ;;  %v1341_v21 = vld [vmem:[#allocation8 + $0x220] ss:$8 sps:$4 sm:$0xff]   ;;  %v1346_v22 = vld [vmem:[#allocation8 + $0x234] ss:$8 sps:$4 sm:$0xff]   ;;  %v1344_v23 = vld [vmem:[#allocation8 + $0x230] ss:$8 sps:$4 sm:$0xff]   ;;  %p1510_p13 = scmp.lt.s32.totalorder %s1103_s16, %s1103_s16 }
  0x75   :  { %786 = vmatprep.subr.bf16.mxu1 %v1274_v31  ;;  %825 = vmatprep.subr.bf16.mxu0 %v1278_v32  ;;  %v1388_v24 = vld [vmem:[#allocation3 + $0x18] ss:$0 sps:$4 sm:$0xff]   ;;  %v1349_v25 = vld [vmem:[#allocation8 + $0x244] ss:$8 sps:$4 sm:$0xff]   ;;  %v1347_v26 = vld [vmem:[#allocation8 + $0x240] ss:$8 sps:$4 sm:$0xff]  }
  0x76   :  { %v1352_v27 = vld [vmem:[#allocation8 + $0x254] ss:$8 sps:$4 sm:$0xff]   ;;  %v1350_v28 = vld [vmem:[#allocation8 + $0x250] ss:$8 sps:$4 sm:$0xff]   ;;  %v1355_v29 = vld [vmem:[#allocation8 + $0x264] ss:$8 sps:$4 sm:$0xff]  }
  0x77   :  { %v1353_v30 = vld [vmem:[#allocation8 + $0x260] ss:$8 sps:$4 sm:$0xff]   ;;  %v1358_v31 = vld [vmem:[#allocation8 + $0x274] ss:$8 sps:$4 sm:$0xff]   ;;  %v1361_v32 = vld [vmem:[#allocation8 + $0x284] ss:$8 sps:$4 sm:$0xff]  }
  0x78   :  { %787 = vmatpush1.bf16.msra.mxu1 %v1279_v33  ;;  %826 = vmatpush1.bf16.msra.mxu0 %v1276_v34  ;;  %v1359_v33 = vld [vmem:[#allocation8 + $0x280] ss:$8 sps:$4 sm:$0xff]   ;;  %v1364_v34 = vld [vmem:[#allocation8 + $0x294] ss:$8 sps:$4 sm:$0xff]   ;;  %vm1094_vm6 = vcmask 57344   ;;  %s1505_s17 = scalar_lea.vmem %s1103_s16, 16 }
  0x79   :  { %788 = vmatprep.subr.bf16.mxu1 %v1280_v35  ;;  %827 = vmatprep.subr.bf16.mxu0 %v1284_v36  ;;  %v1362_v35 = vld [vmem:[#allocation8 + $0x290] ss:$8 sps:$4 sm:$0xff]   ;;  %v1367_v36 = vld [vmem:[#allocation8 + $0x2a4] ss:$8 sps:$4 sm:$0xff]   ;;  %p1506_p12 = scmp.ne.s32.totalorder %s1103_s16, %s1505_s17  ;;  %s1509_s18 = scalar_lea.vmem %s1103_s16, 32 }
  0x7a   :  { %p1511_p0 = scmp.lt.s32.totalorder %s1509_s18, %s1505_s17 }
  0x7c   :  { %789 = vmatpush1.bf16.msra.mxu1 %v1285_v38  ;;  %828 = vmatpush1.bf16.msra.mxu0 %v1282_v37  ;;  %v1365_v37 = vld [vmem:[#allocation8 + $0x2a0] ss:$8 sps:$4 sm:$0xff]   ;;  %v1370_v38 = vld [vmem:[#allocation8 + $0x2b4] ss:$8 sps:$4 sm:$0xff]   ;;  %p1512_p1 = por %p1511_p0, %p1510_p13 }
  0x7d   :  { %790 = vmatprep.subr.bf16.mxu1 %v1286_v39  ;;  %829 = vmatprep.subr.bf16.mxu0 %v1290_v40  ;;  %v1368_v39 = vld [vmem:[#allocation8 + $0x2b0] ss:$8 sps:$4 sm:$0xff]   ;;  %v1373_v40 = vld [vmem:[#allocation8 + $0x2c4] ss:$8 sps:$4 sm:$0xff]  }
  0x7e   :  { %p1513_p2 = pnand %p1512_p1, %p1506_p12 }
  0x80   :  { %791 = vmatpush1.bf16.msra.mxu1 %v1291_v41  ;;  %830 = vmatpush1.bf16.msra.mxu0 %v1288_v42  ;;  %v1371_v41 = vld [vmem:[#allocation8 + $0x2c0] ss:$8 sps:$4 sm:$0xff]   ;;  %v1376_v42 = vld [vmem:[#allocation8 + $0x2d4] ss:$8 sps:$4 sm:$0xff]  }
  0x81   :  { %792 = vmatprep.subr.bf16.mxu1 %v1292_v43  ;;  %831 = vmatprep.subr.bf16.mxu0 %v1296_v44  ;;  %v1374_v43 = vld [vmem:[#allocation8 + $0x2d0] ss:$8 sps:$4 sm:$0xff]   ;;  %v1379_v44 = vld [vmem:[#allocation8 + $0x2e4] ss:$8 sps:$4 sm:$0xff]  }
  0x84   :  { %793 = vmatpush1.bf16.msra.mxu1 %v1297_v46  ;;  %832 = vmatpush1.bf16.msra.mxu0 %v1294_v45  ;;  %v1377_v45 = vld [vmem:[#allocation8 + $0x2e0] ss:$8 sps:$4 sm:$0xff]   ;;  %v1385_v46 = vld [vmem:[#allocation8 + $0x2f4] ss:$8 sps:$4 sm:$0xff]  }
  0x85   :  { %794 = vmatprep.subr.bf16.mxu1 %v1298_v47  ;;  %833 = vmatprep.subr.bf16.mxu0 %v1302_v48  ;;  %v1383_v47 = vld [vmem:[#allocation8 + $0x2f0] ss:$8 sps:$4 sm:$0xff]   ;;  %v1121_v48 = vcombine.low %v1658_v15, %v1658_v15 }
  0x88   :  { %795 = vmatpush1.bf16.msra.mxu1 %v1303_v51  ;;  %834 = vmatpush1.bf16.msra.mxu0 %v1300_v50 }
  0x89   :  { %796 = vmatprep.subr.bf16.mxu1 %v1304_v53  ;;  %835 = vmatprep.subr.bf16.mxu0 %v1308_v54 }
  0x8c   :  { %797 = vmatpush1.bf16.msra.mxu1 %v1309_v58  ;;  %836 = vmatpush1.bf16.msra.mxu0 %v1306_v57 }
  0x8d   :  { %798 = vmatprep.subr.bf16.mxu1 %v1310_v59  ;;  %837 = vmatprep.subr.bf16.mxu0 %v1314_v60 }
  0x90   :  { %799 = vmatpush1.bf16.msra.mxu1 %v1315_v62  ;;  %838 = vmatpush1.bf16.msra.mxu0 %v1312_v61 }
  0x91   :  { %800 = vmatprep.subr.bf16.mxu1 %v1316_v63  ;;  %839 = vmatprep.subr.bf16.mxu0 %v1320_v1 }
  0x94   :  { %801 = vmatpush1.bf16.msra.mxu1 %v1321_v3  ;;  %840 = vmatpush1.bf16.msra.mxu0 %v1318_v2 }
  0x95   :  { %802 = vmatprep.subr.bf16.mxu1 %v1322_v4  ;;  %841 = vmatprep.subr.bf16.mxu0 %v1326_v5 }
  0x98   :  { %803 = vmatpush1.bf16.msra.mxu1 %v1327_v7  ;;  %842 = vmatpush1.bf16.msra.mxu0 %v1324_v6  ;;  %v938_v6 = vlaneseq }
  0x99   :  { %854 = vmatprep.subr.bf16.mxu1 %v1335_v8  ;;  %843 = vmatprep.subr.bf16.mxu0 %v1332_v9  ;;  %v936_v9 = vld [vmem:[#allocation9] ss:$4 sm:$0x3] }
  0x9a   :  { %v939_v7 = vshrl.u32 %v938_v6, 7 }
  0x9b   :  { %805 = vmatmul.mubr.bf16.vlgmr.msra.gmra.mrb[0].mxu1 %v1117_v10 }
  0x9c   :  { %855 = vmatpush1.bf16.msra.mxu1 %v1333_v12  ;;  %844 = vmatpush1.bf16.msra.mxu0 %v1330_v11  ;;  %v940_v8 = vsub.s32 0, %v939_v7  ;;  %v944_v10 = vsub.s32 1, %v939_v7 }
  0x9d   :  { %856 = vmatprep.subr.bf16.mxu1 %v1340_v13  ;;  %895 = vmatprep.subr.bf16.mxu0 %v1382_v14 }
  0x9e   :  { %886 = vmatprep.mubr.bf16.mxu1 %v1122_v18  ;;  %v941_v13 = vrot.slane %v936_v9, %v940_v8 }
  0x9f   :  { %846 = vmatmul.mubr.bf16.vlgmr.msra.gmra.mrb[4].mxu0 %v1119_v16  ;;  %v945_v16 = vrot.slane %v936_v9, %v944_v10 }
  0xa0   :  { %857 = vmatpush1.bf16.msra.mxu1 %v1338_v17  ;;  %896 = vmatpush1.bf16.msra.mxu0 %v1380_v20 }
  0xa1   :  { %858 = vmatprep.subr.bf16.mxu1 %v1343_v19  ;;  %927 = vmatprep.mubr.bf16.mxu0 %v1542_v0  ;;  %v1356_v0 = vld [vmem:[#allocation8 + $0x270] ss:$8 sps:$4 sm:$0xff]  }
  0xa4   :  { %859 = vmatpush1.bf16.msra.mxu1 %v1341_v21 }
  0xa5   :  { %860 = vmatprep.subr.bf16.mxu1 %v1346_v22 }
  0xa7   :  { %1222 = vmatmul.mubr.msk.bf16.vlgmr.msra.gmra.mrb[8].mxu0 %vm768_vm2, %v1388_v24 }
  0xa8   :  { %861 = vmatpush1.bf16.msra.mxu1 %v1344_v23 }
  0xa9   :  { %862 = vmatprep.subr.bf16.mxu1 %v1349_v25 }
  0xac   :  { %863 = vmatpush1.bf16.msra.mxu1 %v1347_v26 }
  0xad   :  { %864 = vmatprep.subr.bf16.mxu1 %v1352_v27 }
  0xb0   :  { %865 = vmatpush1.bf16.msra.mxu1 %v1350_v28  ;;  %v957_v28 = vand.u32 127, %v938_v6 }
  0xb1   :  { %866 = vmatprep.subr.bf16.mxu1 %v1355_v29 }
  0xb2   :  { %v958_v29 = vadd.s32 128, %v957_v28 }
  0xb4   :  { %867 = vmatpush1.bf16.msra.mxu1 %v1353_v30  ;;  %vm960_vm5 = vcmp.lt.s32.totalorder %v958_v29, 200 }
  0xb5   :  { %868 = vmatprep.subr.bf16.mxu1 %v1358_v31 }
  0xb8   :  { %869 = vmatpush1.bf16.msra.mxu1 %v1356_v0 }
  0xb9   :  { %870 = vmatprep.subr.bf16.mxu1 %v1361_v32 }
  0xbc   :  { %871 = vmatpush1.bf16.msra.mxu1 %v1359_v33 }
  0xbd   :  { %872 = vmatprep.subr.bf16.mxu1 %v1364_v34 }
  0xc0   :  { %873 = vmatpush1.bf16.msra.mxu1 %v1362_v35 }
  0xc1   :  { %874 = vmatprep.subr.bf16.mxu1 %v1367_v36 }
  0xc4   :  { %875 = vmatpush1.bf16.msra.mxu1 %v1365_v37  ;;  %v1014_v37 = vld [vmem:[#allocation11 + $0x8] sm:$0xff] }
  0xc5   :  { %876 = vmatprep.subr.bf16.mxu1 %v1370_v38  ;;  %1079 = vmatprep.mubr.f32.mxu0 %v1014_v37 }
  0xc8   :  { %877 = vmatpush1.bf16.msra.mxu1 %v1368_v39 }
  0xc9   :  { %878 = vmatprep.subr.bf16.mxu1 %v1373_v40 }
  0xcc   :  { %879 = vmatpush1.bf16.msra.mxu1 %v1371_v41  ;;  %v984_v41 = vld [vmem:[#allocation9 + $0x1] ss:$4 sm:$0x3] }
  0xcd   :  { %880 = vmatprep.subr.bf16.mxu1 %v1376_v42  ;;  %v999_v42 = vld [vmem:[#allocation9 + $0x2] ss:$4 sm:$0x3] }
  0xd0   :  { %881 = vmatpush1.bf16.msra.mxu1 %v1374_v43  ;;  %v989_v43 = vrot.slane %v984_v41, %v940_v8 }
  0xd1   :  { %882 = vmatprep.subr.bf16.mxu1 %v1379_v44  ;;  %v993_v44 = vrot.slane %v984_v41, %v944_v10 }
  0xd4   :  { %883 = vmatpush1.bf16.msra.mxu1 %v1377_v45 }
  0xd5   :  { %884 = vmatprep.subr.bf16.mxu1 %v1385_v46 }
  0xd8   :  { %885 = vmatpush1.bf16.msra.mxu1 %v1383_v47  ;;  %v1004_v47 = vrot.slane %v999_v42, %v940_v8 }
  0xdb   :  { %887 = vmatmul.mubr.bf16.vlgmr.msra.gmra.mrb[4].mxu1 %v1121_v48  ;;  %v1008_v48 = vrot.slane %v999_v42, %v944_v10 }
 0x132   :  { %v247_v49 = vpop.f32.mrb[0].mxu0 }
 0x133   :  { %v249_v50 = vpop.f32.mrb[1].mxu0 }
 0x134   :  { %v251_v51 = vpop.f32.mrb[2].mxu0 }
 0x135   :  { %v252_v52 = vpop.f32.mrb[3].mxu0 }
 0x16e   :  { %v806_v53 = vpop.f32.mrb[0].mxu1 }
 0x16f   :  { %v807_v54 = vadd.f32 %v806_v53, %v247_v49  ;;  %v808_v55 = vpop.f32.mrb[1].mxu1 }
 0x170   :  { %v809_v56 = vadd.f32 %v808_v55, %v249_v50  ;;  %v810_v57 = vpop.f32.mrb[2].mxu1  ;;  %v1086_v55 = vstv %s1686_s6 }
 0x171   :  { %v811_v58 = vpop.f32.mrb[3].mxu1 }
 0x172   :  { %v847_v59 = vpop.f32.mrb[4].mxu0 }
 0x173   :  { %v848_v60 = vadd.f32 %v847_v59, %v807_v54  ;;  %v849_v61 = vpop.f32.mrb[5].mxu0  ;;  %v1013_v54 = vld [vmem:[#allocation11] sm:$0xff] }
 0x174   :  { %v850_v62 = vadd.f32 %v849_v61, %v809_v56  ;;  %v851_v63 = vpop.f32.mrb[6].mxu0 }
 0x175   :  { %v852_v1 = vpop.f32.mrb[7].mxu0 }
 0x17a   :  { %v929_v2 = vpop.f32.mrb[8].mxu0 }
 0x17b   :  { %v931_v3 = vpop.f32.mrb[9].mxu0 }
 0x17c   :  { %v933_v4 = vpop.f32.mrb[10].mxu0 }
 0x17d   :  { %v934_v5 = vpop.f32.mrb[11].mxu0 }
 0x1ae   :  { %v888_v11 = vpop.f32.mrb[4].mxu1 }
 0x1af   :  { %v889_v12 = vadd.f32 %v888_v11, %v848_v60  ;;  %v890_v14 = vpop.f32.mrb[5].mxu1 }
 0x1b0   :  { %v891_v15 = vadd.f32 %v890_v14, %v850_v62  ;;  %v892_v17 = vpop.f32.mrb[6].mxu1 }
 0x1b1   :  { %v930_v18 = vadd.f32 %v929_v2, %v889_v12  ;;  %v893_v19 = vpop.f32.mrb[7].mxu1 }
 0x1b2   :  { %v932_v20 = vadd.f32 %v931_v3, %v891_v15 }
 0x1b3   :  { %v948_v21 = vadd.f32 %v941_v13, %v930_v18 }
 0x1b4   :  { %v949_v22 = vadd.f32 %v945_v16, %v932_v20 }
 0x1b5   :  { %vm950_vm3 = vcmp.gt.f32.partialorder %v948_v21, 0.0  ;;  %v952_v23 = vmul.f32 0.02, %v948_v21 }
 0x1b6   :  { %vm951_vm4 = vcmp.gt.f32.partialorder %v949_v22, 0.0  ;;  %v953_v24 = vmul.f32 0.02, %v949_v22 }
 0x1b7   :  { %v954_v25 = vsel %vm950_vm3, %v948_v21, %v952_v23 }
 0x1b8   :  { %v955_v26 = vsel %vm951_vm4, %v949_v22, %v953_v24 }
 0x1b9   :  { %v961_v27 = vadd.f32 %v955_v26, %v954_v25 }
 0x1bb   :  { %962 = vadd.xlane.f32.xlu0 %v961_v27 }
 0x248   :  { %v963_v30 = vpop.xlane.xlu0 %962 }
 0x249   :  { %v964_v31 = vmul.f32 0.005, %v963_v30 }
 0x24b   :  { %v965_v0 = vsub.f32 %v954_v25, %v964_v31  ;;  %v966_v32 = vsub.f32 %v955_v26, %v964_v31 }
 0x24d   :  { %v972_v33 = vsel %vm960_vm5, %v966_v32, 0.0  ;;  %v973_v34 = vmul.f32 %v965_v0, %v965_v0 }
 0x24e   :  { %v974_v35 = vmul.f32 %v972_v33, %v972_v33 }
 0x250   :  { %v975_v36 = vadd.f32 %v974_v35, %v973_v34 }
 0x252   :  { %976 = vadd.xlane.f32.xlu0 %v975_v36 }
 0x2df   :  { %v977_v38 = vpop.xlane.xlu0 %976 }
 0x2e0   :  { %v978_v39 = vmul.f32 0.005, %v977_v38 }
 0x2e2   :  { %v979_v40 = vadd.f32 1e-05, %v978_v39 }
 0x2e4   :  { %1389 = vrsqrt.f32 %v979_v40 }
 0x2ee   :  { %v1390_v45 = vpop.eup %1389 }
 0x2ef   :  { %v982_v46 = vmul.f32 %v1390_v45, %v966_v32  ;;  %v981_v49 = vmul.f32 %v1390_v45, %v965_v0 }
 0x2f1   :  { %v997_v50 = vmul.f32 %v993_v44, %v982_v46  ;;  %v996_v51 = vmul.f32 %v989_v43, %v981_v49 }
 0x2f3   :  { %v1012_v52 = vadd.f32 %v1008_v48, %v997_v50  ;;  %v1011_v53 = vadd.f32 %v1004_v47, %v996_v51 }
 0x2f5   :  { %1015 = vmatprep.subr.mxu0 %v1012_v52 }
 0x2f6   :  { %1016 = vmatpush1.xpose.msra.mxu0 %v1011_v53 }
 0x2f9   :  { %1080 = vmatmul.mubr.f32.vlgmr.msra.gmra.mrb[12].mxu0 %v1013_v54 }
 0x3cc   :  { %v1081_v56 = vpop.f32.mrb[12].mxu0 }
 0x3cd   :  { %v1087_v57 = vadd.f32 %v1086_v55, %v1081_v56  ;;  %v1083_v58 = vpop.f32.mrb[13].mxu0 }
 0x3cf   :  { %v1088_v59 = vsub.f32 0.0, %v1087_v57 }
 0x3d1   :  { %v1089_v60 = vmul.f32 1.442695, %v1088_v59 }
 0x3d3   :  { %1391 = vpow2.f32 %v1089_v60 }
 0x3dd   :  { %v1392_v61 = vpop.eup %1391 }
 0x3de   :  { %v1091_v62 = vadd.f32 1.0, %v1392_v61 }
 0x3e0   :  { %1393 = vrcp.f32 %v1091_v62 }
 0x3ea   :  { %v1394_v63 = vpop.eup %1393 }
 0x3eb   :  { %1095 = vst.msk [vmem:[#allocation12] sm:$0x1] %vm1094_vm6, %v1394_v63 }
 0x3ec   :  { %1516 = shalt.err (!%p1513_p2)
}
 0x3ed   :  { %s1517_s20 = scalar_lea.hbm %s1687_s7, 16 }
 0x3ee   :  { %p1518_p3 = scmp.ne.s32.totalorder %s1687_s7, %s1517_s20  ;;  %p1521_p4 = scmp.lt.u32.totalorder %s1517_s20, %s1687_s7 }
 0x3f0   :  { %p1523_p5 = pnand %p1521_p4, %p1518_p3 }
 0x3f2   :  { %1526 = shalt.err (!%p1523_p5)
}
 0x3f3   :  { %1105 = dma.vmem_to_hbm [thread:$0]  %s1103_s16, 16, %s1687_s7, [#allocation5]  }
 0x3f4   :  { %1533 = dma.done.wait [#allocation5], 16  }
 0x3f5   :  { %1534 = vsyncadd [#allocation5], 4294967280 }
 0x3f6   :  { %1109 = vsyncpa [#allocation4], 1 }
 0x3f7   :  { %1110 = vsyncpa [#allocation7], 1 }
 0x3f8   :  { %1111 = vsyncpa [#allocation10], 1 }
 0x3f9   :  { %1112 = vsyncpa [#allocation5], 1 }

</bundles_post_ra>
